<compile_context>
chip_gen: v7x
topology: tpu7x:2x2x1
jax: 0.10.0
libtpu: 0.0.40
codegen_flags: <defaults>
</compile_context>

<pallas_src>
import math

import jax
import jax.numpy as jnp
import numpy as np
from jax.experimental import pallas as pl
from jax.experimental.pallas import tpu as pltpu


# ----------------------------- Pallas kernel --------------------------------

def _embed_kernel(patches_ref, w_ref, b_ref, cls_ref, pos_ref, o_ref):
    """One batch element per grid point.

    patches_ref: (num_patches, patch_dim)
    w_ref:       (patch_dim, dim)        b_ref: (1, dim)
    cls_ref:     (1, dim)                pos_ref: (num_patches + 1, dim)
    o_ref:       (num_patches + 1, dim)
    """
    # Patch embedding: MXU matmul with f32 accumulation, bias add on the VPU.
    y = jnp.dot(patches_ref[...], w_ref[...],
                preferred_element_type=jnp.float32)
    y = y + b_ref[...]
    # Prepend the cls token, add positional embedding (fused epilogue).
    # Dropout(p=0.0) is the identity.
    tokens = jnp.concatenate([cls_ref[...], y], axis=0)   # (n_tok, dim)
    o_ref[...] = (tokens + pos_ref[...]).astype(o_ref.dtype)


# ----------------------------- wrapper ---------------------------------------

def embedding_forward_pallas(img, params, patch_size):
    """img: (B, C, H, W) float32 -> (B, num_patches + 1, dim) float32."""
    B, C, H, W = img.shape
    p = patch_size
    assert H % p == 0 and W % p == 0
    nh, nw = H // p, W // p
    num_patches = nh * nw
    patch_dim = C * p * p
    dim = params['w'].shape[1]
    n_tok = num_patches + 1

    # Rearrange 'b c (h p1) (w p2) -> b (h w) (p1 p2 c)'. Pure layout plumbing
    # (no compute), done with reshape/transpose in the XLA wrapper.
    x = img.reshape(B, C, nh, p, nw, p)          # b c h p1 w p2
    x = x.transpose(0, 2, 4, 3, 5, 1)            # b h w p1 p2 c
    patches = x.reshape(B, num_patches, patch_dim).astype(jnp.float32)

    w = params['w'].astype(jnp.float32)                      # (patch_dim, dim)
    b = params['b'].reshape(1, dim).astype(jnp.float32)
    cls = params['cls_token'].reshape(1, dim).astype(jnp.float32)
    pos = params['pos_emb'].reshape(n_tok, dim).astype(jnp.float32)

    return pl.pallas_call(
        _embed_kernel,
        out_shape=jax.ShapeDtypeStruct((B, n_tok, dim), jnp.float32),
        grid=(B,),
        in_specs=[
            # per-batch patch block (batch dim squeezed out of the kernel Ref)
            pl.BlockSpec((None, num_patches, patch_dim), lambda bi: (bi, 0, 0)),
            # parameters: full-array blocks, invariant across the grid
            pl.BlockSpec((patch_dim, dim), lambda bi: (0, 0)),
            pl.BlockSpec((1, dim), lambda bi: (0, 0)),
            pl.BlockSpec((1, dim), lambda bi: (0, 0)),
            pl.BlockSpec((n_tok, dim), lambda bi: (0, 0)),
        ],
        out_specs=pl.BlockSpec((None, n_tok, dim), lambda bi: (bi, 0, 0)),
        compiler_params=pltpu.CompilerParams(
            dimension_semantics=("parallel",)),   # megacore-shard batch on v7x
    )(patches, w, b, cls, pos)


# ----------------------------- pure-JAX reference ----------------------------

def embedding_forward_ref(img, params, patch_size):
    B, C, H, W = img.shape
    p = patch_size
    nh, nw = H // p, W // p
    num_patches = nh * nw
    patch_dim = C * p * p
    dim = params['w'].shape[1]

    x = img.reshape(B, C, nh, p, nw, p)
    x = x.transpose(0, 2, 4, 3, 5, 1)
    patches = x.reshape(B, num_patches, patch_dim)

    y = jnp.dot(patches, params['w'],
                precision=jax.lax.Precision.HIGHEST) + params['b']
    cls = jnp.broadcast_to(params['cls_token'], (B, 1, dim))
    x = jnp.concatenate([cls, y], axis=1)
    x = x + params['pos_emb'][:, :num_patches + 1]
    # Dropout(p=0.0) -> identity
    return x


# ----------------------------- main -------------------------------------------

if __name__ == "__main__":
    # Module defaults: patch_size=4, width=64, channels=3; small image_size=16.
    image_size, patch_size, width, channels = 16, 4, 64, 3
    B = 2
    num_patches = (image_size // patch_size) ** 2
    patch_dim = channels * patch_size * patch_size

    key = jax.random.PRNGKey(0)
    k_w, k_b, k_pos, k_cls, k_x = jax.random.split(key, 5)

    params = {
        # nn.Linear(patch_dim, dim): stored as (in, out) so forward is x @ w + b
        'w': jax.random.normal(k_w, (patch_dim, width), jnp.float32)
             / math.sqrt(patch_dim),
        'b': jax.random.normal(k_b, (width,), jnp.float32) * 0.02,
        'pos_emb': jax.random.normal(k_pos, (1, num_patches + 1, width),
                                     jnp.float32),
        'cls_token': jax.random.normal(k_cls, (1, 1, width), jnp.float32),
    }

    img = jax.random.normal(k_x, (B, channels, image_size, image_size),
                            jnp.float32)

    out = embedding_forward_pallas(img, params, patch_size)
    out = jax.block_until_ready(out)
    assert out.shape == (B, num_patches + 1, width)

    ref = embedding_forward_ref(img, params, patch_size)
    np.testing.assert_allclose(np.asarray(out), np.asarray(ref),
                               rtol=1e-3, atol=1e-3)

    # TODO(synk): emb_dropout > 0 (training mode) would need pltpu.prng_seed /
    # prng_random_bits inside the kernel; p=0.0 default is the identity here.

    print("KERNEL_OK")
</pallas_src>

<mosaic_0001>
module attributes {stable_mosaic.version = 11 : i64} {
  func.func @_embed_kernel(%arg0: i32, %arg1: memref<1x16x48xf32, #tpu.memory_space<vmem>>, %arg2: memref<48x64xf32, #tpu.memory_space<vmem>>, %arg3: memref<1x64xf32, #tpu.memory_space<vmem>>, %arg4: memref<1x64xf32, #tpu.memory_space<vmem>>, %arg5: memref<17x64xf32, #tpu.memory_space<vmem>>, %arg6: memref<1x17x64xf32, #tpu.memory_space<vmem>>) attributes {dimension_semantics = [#tpu.dimension_semantics<parallel>], iteration_bounds = array<i64: 2>, scalar_prefetch = 0 : i64, scratch_operands = 0 : i64, tpu.core_type = #tpu.core_type<tc>, window_params = [{transform_indices = @transform_0, window_bounds = array<i64: 1, 16, 48>}, {pipeline_mode = #tpu.pipeline_mode<synchronous>, transform_indices = @transform_1, window_bounds = array<i64: 48, 64>}, {pipeline_mode = #tpu.pipeline_mode<synchronous>, transform_indices = @transform_2, window_bounds = array<i64: 1, 64>}, {pipeline_mode = #tpu.pipeline_mode<synchronous>, transform_indices = @transform_3, window_bounds = array<i64: 1, 64>}, {pipeline_mode = #tpu.pipeline_mode<synchronous>, transform_indices = @transform_4, window_bounds = array<i64: 17, 64>}, {transform_indices = @transform_5, window_bounds = array<i64: 1, 17, 64>}]} {
    %c0 = arith.constant 0 : index
    %c0_0 = arith.constant 0 : index
    %c0_1 = arith.constant 0 : index
    %0 = vector.load %arg1[%c0, %c0_0, %c0_1] : memref<1x16x48xf32, #tpu.memory_space<vmem>>, vector<1x16x48xf32>
    %1 = vector.shape_cast %0 : vector<1x16x48xf32> to vector<16x48xf32>
    %c0_2 = arith.constant 0 : index
    %c0_3 = arith.constant 0 : index
    %2 = vector.load %arg2[%c0_2, %c0_3] : memref<48x64xf32, #tpu.memory_space<vmem>>, vector<48x64xf32>
    %cst = arith.constant dense<0.000000e+00> : vector<16x64xf32>
    %3 = tpu.matmul %1, %2, %cst {dimension_numbers = #tpu.dot_dimension_numbers<[1], [0], [0], [1], [0, 0, 1, 1], [], []>} : vector<16x48xf32>, vector<48x64xf32>, vector<16x64xf32> -> vector<16x64xf32>
    %c0_4 = arith.constant 0 : index
    %c0_5 = arith.constant 0 : index
    %4 = vector.load %arg3[%c0_4, %c0_5] : memref<1x64xf32, #tpu.memory_space<vmem>>, vector<1x64xf32>
    %5 = vector.broadcast %4 : vector<1x64xf32> to vector<16x64xf32>
    %6 = arith.addf %3, %5 : vector<16x64xf32>
    %c0_6 = arith.constant 0 : index
    %c0_7 = arith.constant 0 : index
    %7 = vector.load %arg4[%c0_6, %c0_7] : memref<1x64xf32, #tpu.memory_space<vmem>>, vector<1x64xf32>
    %8 = tpu.concatenate %7, %6 in 0 : vector<1x64xf32>, vector<16x64xf32> -> vector<17x64xf32>
    %c0_8 = arith.constant 0 : index
    %c0_9 = arith.constant 0 : index
    %9 = vector.load %arg5[%c0_8, %c0_9] : memref<17x64xf32, #tpu.memory_space<vmem>>, vector<17x64xf32>
    %10 = arith.addf %8, %9 : vector<17x64xf32>
    %c0_10 = arith.constant 0 : index
    %c0_11 = arith.constant 0 : index
    %c0_12 = arith.constant 0 : index
    %11 = vector.load %arg6[%c0_10, %c0_11, %c0_12] : memref<1x17x64xf32, #tpu.memory_space<vmem>>, vector<1x17x64xf32>
    %12 = vector.shape_cast %11 : vector<1x17x64xf32> to vector<17x64xf32>
    %13 = vector.shape_cast %10 : vector<17x64xf32> to vector<1x17x64xf32>
    tpu.vector_store %arg6[%c0_10, %c0_11, %c0_12], %13 {strides = array<i32>} : memref<1x17x64xf32, #tpu.memory_space<vmem>>, vector<1x17x64xf32>,
    return
  }
  func.func @transform_0(%arg0: i32) -> (i32, i32, i32) {
    %c0_i32 = arith.constant 0 : i32
    %c0_i32_0 = arith.constant 0 : i32
    %c0_i32_1 = arith.constant 0 : i32
    return %arg0, %c0_i32, %c0_i32_0 : i32, i32, i32
  }
  func.func @transform_1(%arg0: i32) -> (i32, i32) {
    %c0_i32 = arith.constant 0 : i32
    %c0_i32_0 = arith.constant 0 : i32
    %c0_i32_1 = arith.constant 0 : i32
    return %c0_i32, %c0_i32_0 : i32, i32
  }
  func.func @transform_2(%arg0: i32) -> (i32, i32) {
    %c0_i32 = arith.constant 0 : i32
    %c0_i32_0 = arith.constant 0 : i32
    %c0_i32_1 = arith.constant 0 : i32
    return %c0_i32, %c0_i32_0 : i32, i32
  }
  func.func @transform_3(%arg0: i32) -> (i32, i32) {
    %c0_i32 = arith.constant 0 : i32
    %c0_i32_0 = arith.constant 0 : i32
    %c0_i32_1 = arith.constant 0 : i32
    return %c0_i32, %c0_i32_0 : i32, i32
  }
  func.func @transform_4(%arg0: i32) -> (i32, i32) {
    %c0_i32 = arith.constant 0 : i32
    %c0_i32_0 = arith.constant 0 : i32
    %c0_i32_1 = arith.constant 0 : i32
    return %c0_i32, %c0_i32_0 : i32, i32
  }
  func.func @transform_5(%arg0: i32) -> (i32, i32, i32) {
    %c0_i32 = arith.constant 0 : i32
    %c0_i32_0 = arith.constant 0 : i32
    %c0_i32_1 = arith.constant 0 : i32
    return %arg0, %c0_i32, %c0_i32_0 : i32, i32, i32
  }
}

</mosaic_0001>

<bundles_post_ra>
// kernel: tpu_custom_call.1
= control target key start
LH: loop header
LB: loop body
LE: loop exit
PB: predicated region body
PF: predicated region fallthrough
CT: control target
= control target key end

     0   :  { %10 = vsyncpa [#allocation3], 0  ;;  %s949_s0 = inlined_call_operand.hbm [shape: f32[2,16,48], index: 0, kind: input, shape index: {}]   ;;  %s950_s1 = inlined_call_operand.hbm [shape: f32[48,64], index: 1, kind: input, shape index: {}]   ;;  %s951_s2 = inlined_call_operand.vmem [shape: f32[1,64], index: 2, kind: input, shape index: {}]   ;;  %s952_s3 = inlined_call_operand.vmem [shape: f32[1,64], index: 3, kind: input, shape index: {}]   ;;  %s953_s4 = inlined_call_operand.hbm [shape: f32[17,64], index: 4, kind: input, shape index: {}]   ;;  %s954_s5 = inlined_call_operand.vmem [shape: f32[2,17,64], index: 5, kind: output, shape index: {}]  }
   0x1   :  { %12 = vsyncpa [#allocation3 + $0x1], 0 }
   0x2   :  { %13 = vsyncpa [#allocation5], 0  ;;  %s757_s18 = smov 0   ;;  %s759_s19 = smov 0  }
   0x3   :  { %s761_s20 = smov 0   ;;  %s763_s21 = smov 0  }
   0x4 LB: > { %s776_s22 = sadd.s32 4294967295, %s720_s21   ;;  %p39_p0 = scmp.ne.s32.totalorder %s712_s19, %s708_s18  ;;  %s720_s21 = sphi %s763_s21, %s969_s21   ;;  %s716_s20 = sphi %s761_s20, %s968_s20   ;;  %s712_s19 = sphi %s759_s19, %s967_s19   ;;  %s708_s18 = sphi %s757_s18, %s966_s18  }
   0x5   : > { %p955_p1 = scmp.eq.s32.totalorder %s776_s22, 0  ;;  %p480_p2 = scmp.ge.s32.totalorder %s720_s21, 1 }
   0x6   : > { %p160_p3 = scmp.lt.s32.totalorder %s720_s21, 3  ;;  %s722_s25 = smov [#allocation4]  }
   0x7   : > { %p784_p4 = por %p955_p1, %p39_p0  ;;  %s172_s26 = sshll.u32 %s722_s25, 4  ;;  %s173_s26 = int_to_ptr.vmem [resolvable:$true] %s172_s26 }
   0x8   : > { %p788_p5 = pnand %p480_p2, %p160_p3  ;;  %s723_s28 = smov [#allocation6]  }
   0x9   : > { %s958_s23 = scalar_select %p784_p4, 1, 0 }
   0xa   : > { %s959_s24 = scalar_select %p788_p5, 1, 0 }
   0xb   : > { %p544_p6 = pneg %p788_p5  ;;  %s191_s29 = sshll.u32 %s723_s28, 4  ;;  %s800_s29 = int_to_ptr.vmem [resolvable:$true] %s191_s29 }
   0xc   : > { %s596_s7 = scalar_lea.hbm %s950_s1, 768 }
   0xd   : > { %p796_p7 = pnand %p544_p6, %p955_p1  ;;  %p597_p8 = scmp.ne.s32.totalorder %s950_s1, %s596_s7 }
   0xe   : > { %p603_p12 = scmp.lt.u32.totalorder %s596_s7, %s950_s1 }
   0xf   : > { %p598_p9 = pneg %p796_p7 }
  0x11   : > { %p599_p10 = pnand %p598_p9, %p597_p8 }
  0x13   : > { %p600_p11 = pneg %p599_p10 }
  0x15   : > { %p605_p13 = pnand %p603_p12, %p600_p11 }
  0x17   : > { %608 = shalt.err (!%p605_p13)
}
  0x18   : > { %s609_s12 = scalar_lea.vmem %s173_s26, 768  ;;  %p617_p6 = scmp.lt.s32.totalorder %s173_s26, %s173_s26 }
  0x19   : > { %p610_p0 = scmp.ne.s32.totalorder %s173_s26, %s609_s12  ;;  %p618_p1 = scmp.lt.s32.totalorder %s609_s12, %s609_s12 }
  0x1b   : > { %p612_p2 = pnand %p610_p0, %p598_p9  ;;  %p619_p4 = por %p618_p1, %p617_p6 }
  0x1d   : > { %p613_p3 = pneg %p612_p2 }
  0x1f   : > { %p620_p5 = pnand %p619_p4, %p613_p3 }
  0x21   : > { %623 = shalt.err (!%p620_p5)
}
  0x22   : > { %s724_s13 = smov 128   ;;  %s725_s14 = smov 8  }
  0x23   : > { %547 = dma.hbm_to_vmem [thread:$0]  (!%p796_p7), %s950_s1, 768, %s173_s26, [#allocation5], %s724_s13, %s724_s13, %s725_s14  }
  0x24   : > { %s624_s25 = scalar_lea.hbm %s953_s4, 384 }
  0x25   : > { %p625_p1 = scmp.ne.s32.totalorder %s953_s4, %s624_s25  ;;  %p631_p8 = scmp.lt.u32.totalorder %s624_s25, %s953_s4 }
  0x27   : > { %p627_p4 = pnand %p625_p1, %p598_p9 }
  0x29   : > { %p628_p5 = pneg %p627_p4 }
  0x2b   : > { %p633_p10 = pnand %p631_p8, %p628_p5 }
  0x2d   : > { %636 = shalt.err (!%p633_p10)
}
  0x2e   : > { %s637_s26 = scalar_lea.vmem %s800_s29, 384  ;;  %p645_p0 = scmp.lt.s32.totalorder %s800_s29, %s800_s29 }
  0x2f   : > { %p638_p11 = scmp.ne.s32.totalorder %s800_s29, %s637_s26  ;;  %p646_p2 = scmp.lt.s32.totalorder %s637_s26, %s637_s26 }
  0x31   : > { %p640_p12 = pnand %p638_p11, %p598_p9  ;;  %p647_p3 = por %p646_p2, %p645_p0 }
  0x33   : > { %p641_p13 = pneg %p640_p12 }
  0x35   : > { %p648_p6 = pnand %p647_p3, %p641_p13 }
  0x37   : > { %651 = shalt.err (!%p648_p6)
}
  0x38   : > { %550 = dma.hbm_to_vmem [thread:$0]  (!%p796_p7), %s953_s4, 384, %s800_s29, [#allocation5], %s724_s13, %s724_s13, %s725_s14  }
  0x39   : > { %s856_s10 = sadd.s32 1, %s720_s21   ;;  %s26_s27 = sadd.s32 1, %s716_s20 }
  0x3a   : > { %s23_s11 = ssub.s32 %s720_s21, %s856_s10  ;;  %p33_p9 = scmp.ne.s32.totalorder %s716_s20, %s712_s19 }
  0x3b   : > { %p24_p1 = scmp.eq.s32.totalorder %s23_s11, 0  ;;  %p34_p4 = scmp.eq.s32.totalorder %s720_s21, 0 }
  0x3c   : > { %p557_p5 = scmp.lt.s32.totalorder %s720_s21, 2  ;;  %s205_s12 = sand.u32 1, %s716_s20  }
  0x3d   : > { %s867_s15 = scalar_select %p24_p1, %s716_s20, %s26_s27  }
  0x3e   : > { %p35_p8 = por %p34_p4, %p33_p9  ;;  %s484_s16 = sshll.u32 %s205_s12, 4 }
  0x3f   : > { %s497_s17 = sshll.u32 %s720_s21, 8  ;;  %s209_s29 = scalar_lea.vmem [#allocation2], %s484_s16 }
  0x40   : > { %s873_s28 = scalar_lea.hbm %s949_s0, %s497_s17  ;;  %s216_s30 = sshll.u32 %s209_s29, 4  ;;  %s879_s30 = int_to_ptr.vmem [resolvable:$true] %s216_s30 }
  0x41   : > { %p875_p7 = pnand %p557_p5, %p35_p8  ;;  %s881_s21 = scalar_lea.sflag [#allocation3], %s205_s12 }
  0x42   : > { %s652_s7 = scalar_lea.hbm %s873_s28, 256  ;;  %s657_s9 = scalar_lea.hbm %s949_s0, 512 }
  0x43   : > { %p653_p10 = scmp.ne.s32.totalorder %s873_s28, %s652_s7  ;;  %p654_p11 = pneg %p875_p7 }
  0x44   : > { %p658_p0 = scmp.lt.u32.totalorder %s873_s28, %s949_s0  ;;  %p659_p2 = scmp.lt.u32.totalorder %s657_s9, %s652_s7 }
  0x45   : > { %p655_p12 = pnand %p654_p11, %p653_p10  ;;  %p661_p6 = scmp.lt.u32.totalorder %s652_s7, %s873_s28 }
  0x46   : > { %p660_p3 = por %p659_p2, %p658_p0 }
  0x47   : > { %p656_p13 = pneg %p655_p12 }
  0x48   : > { %p662_p9 = por %p661_p6, %p660_p3 }
  0x4a   : > { %p663_p1 = pnand %p662_p9, %p656_p13 }
  0x4c   : > { %666 = shalt.err (!%p663_p1)
}
  0x4d   : > { %s667_s12 = scalar_lea.vmem %s879_s30, 256  ;;  %s726_s16 = smov [#allocation2]  }
  0x4e   : > { %p668_p4 = scmp.ne.s32.totalorder %s879_s30, %s667_s12  ;;  %s672_s17 = sshll.u32 %s726_s16, 4  ;;  %s673_s17 = int_to_ptr.vmem [resolvable:$false] %s672_s17 }
  0x4f   : > { %s674_s18 = scalar_lea.vmem %s673_s17, 512  ;;  %p675_p10 = scmp.lt.s32.totalorder %s879_s30, %s673_s17 }
  0x50   : > { %p670_p5 = pnand %p668_p4, %p654_p11  ;;  %p676_p12 = scmp.lt.s32.totalorder %s674_s18, %s667_s12 }
  0x52   : > { %p671_p8 = pneg %p670_p5  ;;  %p677_p0 = por %p676_p12, %p675_p10 }
  0x54   : > { %p678_p2 = pnand %p677_p0, %p671_p8 }
  0x56   : > { %681 = shalt.err (!%p678_p2)
}
  0x57   : > { %554 = dma.hbm_to_vmem [thread:$0]  (!%p875_p7), %s873_s28, 256, %s879_s30, %s881_s21, %s724_s13, %s724_s13, %s725_s14  }
  0x58   : > { %p962_p11 = scmp.ne.s32.totalorder %s959_s24, 0 }
  0x59   : > { %s230_s25 = sand.u32 (!%p962_p11), 1, %s712_s19   ;;  %p963_p13 = scmp.ne.s32.totalorder (!%p962_p11), %s958_s23, 0 }
  0x5a   : > { %228 = sbr.rel (%p962_p11) target bundleno = 337 (0x151), region = 40  ;;  %s488_s29 = sshll.u32 (!%p962_p11), %s230_s25, 4 }
  0x5b   : > { %s231_s7 = scalar_lea.sflag (!%p962_p11), [#allocation3], %s230_s25  ;;  %s234_s26 = scalar_lea.vmem (!%p962_p11), [#allocation2], %s488_s29 }
  0x61   : > { %699 = dma.done.wait (%p963_p13), %s231_s7, 256  }
  0x62   : > { %701 = vsyncadd (%p963_p13), %s231_s7, 4294967040  ;;  %p964_p3 = scmp.eq.s32.totalorder %s776_s22, 0 }
  0x64   : > { %703 = dma.done.wait (%p964_p3), [#allocation5], 1152   ;;  %p965_p6 = pmov %p964_p3 }
  0x65   : > { %v276_v0 = vld [vmem:[#allocation4] sm:$0xff]  ;;  %v277_v1 = vld [vmem:[#allocation4 + $0x8] sm:$0xff]  ;;  %v278_v2 = vld [vmem:[#allocation4 + $0x10] sm:$0xff]  ;;  %vm289_vm0 = vcmask 392192   ;;  %p269_p7 = scmp.lt.s32.totalorder %s776_s22, 1  ;;  %vm374_vm1 = vcmask 1040384  }
  0x66   : > { %705 = vsyncadd (%p965_p6), [#allocation5], 4294966144  ;;  %v521_v3 = vpack.c.bf16 %v277_v1, %v276_v0  ;;  %v279_v4 = vld [vmem:[#allocation4 + $0x18] sm:$0xff]  ;;  %v280_v6 = vld [vmem:[#allocation4 + $0x20] sm:$0xff]  ;;  %vm391_vm2 = vcmask 516096   ;;  %vm388_vm3 = vcmask 523264  }
  0x67   : > { %v525_v5 = vpack.c.bf16 %v279_v4, %v278_v2  ;;  %v281_v7 = vld [vmem:[#allocation4 + $0x28] sm:$0xff]  ;;  %v274_v8 = vld [vmem:[%s234_s26] sm:$0xff]  ;;  %s971_s22 = smov (!%p269_p7, %s776_s22), 1  ;;  %v383_v21 = vld [vmem:[#allocation6 + $0x8] sm:$0xff] }
  0x68   : > { %522 = vmatprep.subr.bf16.mxu0 %v521_v3  ;;  %518 = vmatprep.mubr.msk.f32.mxu0 %vm289_vm0, %v274_v8  ;;  %v529_v9 = vpack.c.bf16 %v281_v7, %v280_v6  ;;  %v275_v10 = vld [vmem:[%s234_s26 + $0x8] sm:$0xff]  ;;  %v492_v11 = vld [vmem:[%s951_s2] ss:$0 sm:$0xff]  ;;  %s533_s13 = smul.u32 24, %s971_s22  ;;  %v382_v20 = vld [vmem:[#allocation6] sm:$0xff] }
  0x69   : > { %524 = vmatpush3.bf16.msra.mxu0 %v521_v3  ;;  %v384_v15 = vld [vmem:[#allocation6 + $0x10] sm:$0x1] }
  0x6a   : > { %526 = vmatprep.subr.bf16.mxu0 %v525_v5  ;;  %v371_v18 = vld [vmem:[%s952_s3] sm:$0x1]  ;;  %s273_s21 = scalar_lea.vmem %s954_s5, %s533_s13 }
  0x6d   : > { %528 = vmatpush3.bf16.msra.mxu0 %v525_v5 }
  0x6e   : > { %530 = vmatprep.subr.bf16.mxu0 %v529_v9 }
  0x71   : > { %532 = vmatpush3.bf16.msra.mxu0 %v529_v9 }
  0x74   : > { %519 = vmatmul.mubr.msk.f32.vlgmr.msra.gmra.mrb[0].mxu0 %vm289_vm0, %v275_v10 }
 0x147   : > { %v520_v12 = vpop.f32.mrb[0].mxu0 }
 0x148   : > { %v368_v13 = vadd.f32 %v520_v12, %v492_v11  ;;  %v362_v14 = vpop.f32.mrb[1].mxu0 }
 0x149   : > { %v363_v16 = vadd.f32 %v492_v11, %v362_v14 }
 0x14a   : > { %v376_v17 = vrot.slane %v368_v13, 7 }
 0x14b   : > { %v375_v19 = vrot.slane %v363_v16, 7 }
 0x14c   : > { %v387_v22 = vadd.f32 %v384_v15, %v376_v17 }
 0x14d   : > { %v377_v23 = vsel %vm374_vm1, %v375_v19, %v376_v17  ;;  %v381_v24 = vsel %vm374_vm1, %v371_v18, %v375_v19 }
 0x14e   : > { %392 = vst.msk [vmem:[%s273_s21 + $0x10] sm:$0x1] %vm391_vm2, %v387_v22  ;;  %v385_v25 = vadd.f32 %v382_v20, %v381_v24  ;;  %v386_v26 = vadd.f32 %v383_v21, %v377_v23 }
 0x150   : > { %389 = vst.msk [vmem:[%s273_s21] sm:$0xff] %vm388_vm3, %v385_v25  ;;  %390 = vst.msk [vmem:[%s273_s21 + $0x8] sm:$0xff] %vm388_vm3, %v386_v26 }
 0x151 PF: > { %p16_p9 = scmp.ge.s32.totalorder %s856_s10, 4   ;;  %s966_s18 = smov %s712_s19 }
 0x152   : > { %s967_s19 = smov %s716_s20  ;;  %s968_s20 = smov %s867_s15 }
 0x153   : > { %s969_s21 = smov %s856_s10  ;;  %18 = sbr.rel (!%p16_p9) target bundleno = 4 (0x4), region = 88 }
 0x15a   :  { %414 = vsyncpa [#allocation3], 1 }
 0x15b   :  { %416 = vsyncpa [#allocation3 + $0x1], 1 }
 0x15c   :  { %417 = vsyncpa [#allocation5], 1 }

</bundles_post_ra>
